<compile_context>
chip_gen: v7x
topology: tpu7x:2x2x1
jax: 0.10.0
libtpu: 0.0.40
codegen_flags: <defaults>
</compile_context>

<pallas_src>
import functools

import jax
import jax.numpy as jnp
from jax.experimental import pallas as pl
from jax.experimental.pallas import tpu as pltpu

BN_EPS = 1e-5


def _round_up(x, m):
    return ((x + m - 1) // m) * m


def _balanced_tile(total, max_tile, align):
    """Smallest-padding tile <= max_tile (aligned). Returns (tile, padded_total)."""
    total_aligned = _round_up(max(total, align), align)
    max_tile = _round_up(max_tile, align)
    n = -(-total_aligned // max_tile)
    tile = _round_up(-(-total_aligned // n), align)
    return tile, n * tile


@functools.lru_cache(maxsize=1)
def _vmem_capacity_bytes():
    try:
        info = pltpu.get_tpu_info()
        cap = getattr(info, "vmem_capacity_bytes", None)
        if cap and int(cap) > 0:
            return int(cap)
    except Exception:
        pass
    return None


def _vmem_limit_bytes():
    cap = _vmem_capacity_bytes()
    if cap is None:
        return 48 * 1024 * 1024
    # ~72% on 64 MiB parts (v7x), ~82% on 128 MiB parts (v5e/v6e).
    frac = 0.72 if cap <= 80 * 1024 * 1024 else 0.82
    return int(cap * frac)


def _default_tiles():
    """(tile_b, tile_k, tile_n) defaults per VMEM generation."""
    cap = _vmem_capacity_bytes()
    if cap is not None and cap >= 96 * 1024 * 1024:
        return 1024, 1024, 512          # v5e / v6e: exploit 128 MiB VMEM
    return 512, 512, 512                # v7x / unknown: 64 MiB VMEM


# ---------------------------------------------------------------------------
# Pass 1: h = x @ Wb (K-tiled, accumulate in the VMEM-resident f32 output
# block) + per-batch-tile partial sum / sum-of-squares of h.
# Grid: (batch tiles [parallel], K tiles [arbitrary]).
# ---------------------------------------------------------------------------
def _bottleneck_stats_kernel(x_ref, wb_ref, h_ref, sum_ref, sumsq_ref):
    ki = pl.program_id(1)
    nk = pl.num_programs(1)

    @pl.when(ki == 0)
    def _():
        h_ref[...] = jnp.zeros_like(h_ref)

    h_ref[...] += jnp.dot(
        x_ref[...], wb_ref[...], preferred_element_type=jnp.float32
    )

    # Finalize this batch tile: emit its partial stats (no cross-tile carry,
    # so the batch grid axis can be "parallel").
    @pl.when(ki == nk - 1)
    def _():
        h = h_ref[...]
        s1 = jnp.sum(h, axis=0, keepdims=True)          # (1, bott_pad)
        s2 = jnp.sum(h * h, axis=0, keepdims=True)
        sum_ref[...] = jnp.broadcast_to(s1[None], sum_ref.shape)
        sumsq_ref[...] = jnp.broadcast_to(s2[None], sumsq_ref.shape)


# ---------------------------------------------------------------------------
# Pass 2: out = (h * s) @ W + bias_row   (BN already folded into s / bias_row)
# Grid: (batch tiles [parallel], out_dim tiles [parallel]).
# ---------------------------------------------------------------------------
def _output_matmul_kernel(h_ref, s_ref, w_ref, bias_ref, o_ref):
    hs = (h_ref[...] * s_ref[...]).astype(w_ref.dtype)   # VPU mul, hides under MXU
    acc = jnp.dot(hs, w_ref[...], preferred_element_type=jnp.float32)
    o_ref[...] = (acc + bias_ref[...]).astype(o_ref.dtype)


# ---------------------------------------------------------------------------
# One-time parameter preparation: transpose torch (out, in) weights, pad every
# lane dimension to a multiple of 128 (balanced against the tile size), and
# cast matmul operands to the compute dtype.  Done OUTSIDE the forward path.
# ---------------------------------------------------------------------------
def prepare_params(params, *, tile_k=None, tile_n=None, compute_dtype=jnp.float32):
    bottleneck, in_dim = params["w_bottleneck"].shape
    out_dim = params["w_linear"].shape[0]

    def_tb, def_tk, def_tn = _default_tiles()
    tile_k = def_tk if tile_k is None else tile_k
    tile_n = def_tn if tile_n is None else tile_n

    tk, in_pad = _balanced_tile(in_dim, tile_k, 128)
    tn, out_pad = _balanced_tile(out_dim, tile_n, 128)
    bott_pad = _round_up(bottleneck, 128)

    wb = jnp.zeros((in_pad, bott_pad), compute_dtype)
    wb = wb.at[:in_dim, :bottleneck].set(
        params["w_bottleneck"].T.astype(compute_dtype))
    w = jnp.zeros((bott_pad, out_pad), compute_dtype)
    w = w.at[:bottleneck, :out_dim].set(
        params["w_linear"].T.astype(compute_dtype))
    gamma = jnp.zeros((1, bott_pad), jnp.float32).at[0, :bottleneck].set(
        params["bn_gamma"].astype(jnp.float32))
    beta = jnp.zeros((1, bott_pad), jnp.float32).at[0, :bottleneck].set(
        params["bn_beta"].astype(jnp.float32))
    b = jnp.zeros((1, out_pad), jnp.float32).at[0, :out_dim].set(
        params["b_linear"].astype(jnp.float32))

    return dict(
        wb=wb, w=w, gamma=gamma, beta=beta, b=b,
        in_dim=in_dim, bottleneck=bottleneck, out_dim=out_dim,
        in_pad=in_pad, bott_pad=bott_pad, out_pad=out_pad,
        tile_k=tk, tile_n=tn, default_tile_b=def_tb,
        compute_dtype=compute_dtype,
    )


def linear_module_forward(x, prep, *, tile_b=None):
    """bottleneck Linear -> BatchNorm1d (training-mode stats) -> Linear."""
    B, in_dim = x.shape
    assert in_dim == prep["in_dim"]
    in_pad, bott_pad, out_pad = prep["in_pad"], prep["bott_pad"], prep["out_pad"]
    tk, tn = prep["tile_k"], prep["tile_n"]
    cdt = prep["compute_dtype"]
    out_dtype = x.dtype

    tile_b = prep["default_tile_b"] if tile_b is None else tile_b
    tb, b_pad = _balanced_tile(B, tile_b, 8)

    x_p = x.astype(cdt)
    if (b_pad, in_pad) != (B, in_dim):
        # Zero padding is statistics-safe: padded rows/cols contribute 0 to the
        # sums, and mean/var are divided by the true B below.
        x_p = jnp.zeros((b_pad, in_pad), cdt).at[:B, :in_dim].set(x_p)

    nb = b_pad // tb
    nk = in_pad // tk
    nn = out_pad // tn
    vmem_limit = _vmem_limit_bytes()

    # ---- pass 1: bottleneck matmul + per-batch-tile partial BN stats --------
    h, psum, psumsq = pl.pallas_call(
        _bottleneck_stats_kernel,
        out_shape=(
            jax.ShapeDtypeStruct((b_pad, bott_pad), jnp.float32),
            jax.ShapeDtypeStruct((nb, 8, bott_pad), jnp.float32),
            jax.ShapeDtypeStruct((nb, 8, bott_pad), jnp.float32),
        ),
        grid_spec=pltpu.PrefetchScalarGridSpec(
            num_scalar_prefetch=0,
            grid=(nb, nk),
            in_specs=[
                pl.BlockSpec((tb, tk), lambda bi, ki: (bi, ki)),
                pl.BlockSpec((tk, bott_pad), lambda bi, ki: (ki, 0)),
            ],
            out_specs=(
                pl.BlockSpec((tb, bott_pad), lambda bi, ki: (bi, 0)),
                pl.BlockSpec((1, 8, bott_pad), lambda bi, ki: (bi, 0, 0)),
                pl.BlockSpec((1, 8, bott_pad), lambda bi, ki: (bi, 0, 0)),
            ),
        ),
        compiler_params=pltpu.CompilerParams(
            # K carries the matmul accumulation (sequential); batch is
            # independent per tile -> shard across v7x's two TensorCores.
            dimension_semantics=("parallel", "arbitrary"),
            vmem_limit_bytes=vmem_limit,
        ),
    )(x_p, prep["wb"])

    # ---- fold BatchNorm into the second matmul (tiny O(bott*out) JAX math) --
    n = jnp.float32(B)                                     # true batch size
    ssum = psum[:, 0, :].sum(axis=0, keepdims=True)        # (1, bott_pad) f32
    ssq = psumsq[:, 0, :].sum(axis=0, keepdims=True)
    mean = ssum / n
    var = jnp.maximum(ssq / n - mean * mean, 0.0)          # biased variance
    s = prep["gamma"] * jax.lax.rsqrt(var + BN_EPS)        # (1, bott_pad) f32
    bias_row = jnp.dot(
        (prep["beta"] - mean * s).astype(prep["w"].dtype), prep["w"],
        preferred_element_type=jnp.float32,
    ) + prep["b"]                                          # (1, out_pad) f32

    # ---- pass 2: (h*s) @ W + bias, tiled over batch and out_dim --------------
    out_p = pl.pallas_call(
        _output_matmul_kernel,
        out_shape=jax.ShapeDtypeStruct((b_pad, out_pad), out_dtype),
        grid_spec=pltpu.PrefetchScalarGridSpec(
            num_scalar_prefetch=0,
            grid=(nb, nn),
            in_specs=[
                pl.BlockSpec((tb, bott_pad), lambda bi, j: (bi, 0)),
                pl.BlockSpec((1, bott_pad), lambda bi, j: (0, 0)),
                pl.BlockSpec((bott_pad, tn), lambda bi, j: (0, j)),
                pl.BlockSpec((1, tn), lambda bi, j: (0, j)),
            ],
            out_specs=pl.BlockSpec((tb, tn), lambda bi, j: (bi, j)),
        ),
        compiler_params=pltpu.CompilerParams(
            dimension_semantics=("parallel", "parallel"),
            vmem_limit_bytes=vmem_limit,
        ),
    )(h, s, prep["w"], bias_row)

    return out_p[:B, : prep["out_dim"]]


# ---------------------------------------------------------------------------
# Pure-JAX reference mirroring the PyTorch module in training mode.
# ---------------------------------------------------------------------------
def _reference_forward(x, params):
    h = x @ params["w_bottleneck"].T
    mean = h.mean(axis=0, keepdims=True)
    var = ((h - mean) ** 2).mean(axis=0, keepdims=True)    # biased, like BN train
    h = (h - mean) / jnp.sqrt(var + BN_EPS)
    h = h * params["bn_gamma"] + params["bn_beta"]
    return h @ params["w_linear"].T + params["b_linear"]


def init_params(key, in_dim, out_dim, bottleneck):
    k1, k2, k3 = jax.random.split(key, 3)
    return {
        "w_bottleneck": jax.random.normal(k1, (bottleneck, in_dim), jnp.float32)
        * (1.0 / jnp.sqrt(in_dim)),
        "bn_gamma": jnp.ones((bottleneck,), jnp.float32),
        "bn_beta": jnp.zeros((bottleneck,), jnp.float32),
        "w_linear": jax.random.normal(k2, (out_dim, bottleneck), jnp.float32)
        * (1.0 / jnp.sqrt(bottleneck)),
        "b_linear": jax.random.normal(k3, (out_dim,), jnp.float32) * 0.01,
    }


if __name__ == "__main__":
    # Small shapes consistent with the module: X is (batch, in_dim).  Chosen so
    # the test exercises multiple batch tiles, multiple K tiles, multiple N
    # tiles, and lane padding (bottleneck/out_dim not multiples of 128).
    B, IN_DIM, BOTTLENECK, OUT_DIM = 24, 300, 24, 200

    key = jax.random.PRNGKey(0)
    kx, kp = jax.random.split(key)
    x = jax.random.normal(kx, (B, IN_DIM), jnp.float32)
    params = init_params(kp, IN_DIM, OUT_DIM, BOTTLENECK)
    ref = _reference_forward(x, params)

    # f32 path (matches the PyTorch float32 module closely).
    prep = prepare_params(params, tile_k=128, tile_n=128)
    out = linear_module_forward(x, prep, tile_b=8)
    out = jax.block_until_ready(out)
    assert out.shape == (B, OUT_DIM)
    assert jnp.allclose(out, ref, atol=1e-3, rtol=1e-3), "f32 mismatch vs reference"

    # bf16 MXU path (bf16 operands, f32 accumulation / BN math) — looser check.
    prep_bf16 = prepare_params(params, tile_k=128, tile_n=128,
                               compute_dtype=jnp.bfloat16)
    out_bf16 = linear_module_forward(x, prep_bf16, tile_b=8)
    out_bf16 = jax.block_until_ready(out_bf16)
    assert out_bf16.shape == (B, OUT_DIM)
    assert jnp.allclose(out_bf16.astype(jnp.float32), ref, atol=5e-2, rtol=5e-2), \
        "bf16 mismatch vs reference"

    print("KERNEL_OK")
</pallas_src>

<mosaic_0001>
module attributes {stable_mosaic.version = 11 : i64} {
  func.func @_bottleneck_stats_kernel(%arg0: i32, %arg1: i32, %arg2: memref<8x128xf32, #tpu.memory_space<vmem>>, %arg3: memref<128x128xf32, #tpu.memory_space<vmem>>, %arg4: memref<8x128xf32, #tpu.memory_space<vmem>>, %arg5: memref<1x8x128xf32, #tpu.memory_space<vmem>>, %arg6: memref<1x8x128xf32, #tpu.memory_space<vmem>>) attributes {dimension_semantics = [#tpu.dimension_semantics<parallel>, #tpu.dimension_semantics<arbitrary>], iteration_bounds = array<i64: 3, 3>, scalar_prefetch = 0 : i64, scratch_operands = 0 : i64, tpu.core_type = #tpu.core_type<tc>, window_params = [{transform_indices = @transform_0, window_bounds = array<i64: 8, 128>}, {transform_indices = @transform_1, window_bounds = array<i64: 128, 128>}, {transform_indices = @transform_2, window_bounds = array<i64: 8, 128>}, {transform_indices = @transform_3, window_bounds = array<i64: 1, 8, 128>}, {transform_indices = @transform_4, window_bounds = array<i64: 1, 8, 128>}]} {
    %c0_i32 = arith.constant 0 : i32
    %0 = arith.cmpi eq, %arg1, %c0_i32 : i32
    %1 = arith.extui %0 : i1 to i32
    %c0_i32_0 = arith.constant 0 : i32
    %2 = arith.cmpi ne, %1, %c0_i32_0 : i32
    scf.if %2 {
      %cst_9 = arith.constant 0.000000e+00 : f32
      %12 = vector.broadcast %cst_9 : f32 to vector<8x128xf32>
      %c0_10 = arith.constant 0 : index
      %c0_11 = arith.constant 0 : index
      %13 = vector.load %arg4[%c0_10, %c0_11] : memref<8x128xf32, #tpu.memory_space<vmem>>, vector<8x128xf32>
      tpu.vector_store %arg4[%c0_10, %c0_11], %12 {strides = array<i32>} : memref<8x128xf32, #tpu.memory_space<vmem>>, vector<8x128xf32>,
    } else {
    }
    %c0 = arith.constant 0 : index
    %c0_1 = arith.constant 0 : index
    %3 = vector.load %arg4[%c0, %c0_1] : memref<8x128xf32, #tpu.memory_space<vmem>>, vector<8x128xf32>
    %c0_2 = arith.constant 0 : index
    %c0_3 = arith.constant 0 : index
    %4 = vector.load %arg2[%c0_2, %c0_3] : memref<8x128xf32, #tpu.memory_space<vmem>>, vector<8x128xf32>
    %c0_4 = arith.constant 0 : index
    %c0_5 = arith.constant 0 : index
    %5 = vector.load %arg3[%c0_4, %c0_5] : memref<128x128xf32, #tpu.memory_space<vmem>>, vector<128x128xf32>
    %cst = arith.constant dense<0.000000e+00> : vector<8x128xf32>
    %6 = tpu.matmul %4, %5, %cst {dimension_numbers = #tpu.dot_dimension_numbers<[1], [0], [0], [1], [0, 0, 1, 1], [], []>} : vector<8x128xf32>, vector<128x128xf32>, vector<8x128xf32> -> vector<8x128xf32>
    %7 = arith.addf %3, %6 : vector<8x128xf32>
    %c0_6 = arith.constant 0 : index
    %c0_7 = arith.constant 0 : index
    %8 = vector.load %arg4[%c0_6, %c0_7] : memref<8x128xf32, #tpu.memory_space<vmem>>, vector<8x128xf32>
    tpu.vector_store %arg4[%c0_6, %c0_7], %7 {strides = array<i32>} : memref<8x128xf32, #tpu.memory_space<vmem>>, vector<8x128xf32>,
    %c2_i32 = arith.constant 2 : i32
    %9 = arith.cmpi eq, %arg1, %c2_i32 : i32
    %10 = arith.extui %9 : i1 to i32
    %c0_i32_8 = arith.constant 0 : i32
    %11 = arith.cmpi ne, %10, %c0_i32_8 : i32
    scf.if %11 {
      %c0_9 = arith.constant 0 : index
      %c0_10 = arith.constant 0 : index
      %12 = vector.load %arg4[%c0_9, %c0_10] : memref<8x128xf32, #tpu.memory_space<vmem>>, vector<8x128xf32>
      %cst_11 = arith.constant dense<0.000000e+00> : vector<128xf32>
      %13 = vector.multi_reduction <add>, %12, %cst_11 [0] : vector<8x128xf32> to vector<128xf32>
      %14 = vector.shape_cast %13 : vector<128xf32> to vector<1x128xf32>
      %15 = arith.mulf %12, %12 : vector<8x128xf32>
      %cst_12 = arith.constant dense<0.000000e+00> : vector<128xf32>
      %16 = vector.multi_reduction <add>, %15, %cst_12 [0] : vector<8x128xf32> to vector<128xf32>
      %17 = vector.shape_cast %16 : vector<128xf32> to vector<1x128xf32>
      %18 = vector.shape_cast %14 : vector<1x128xf32> to vector<1x1x128xf32>
      %19 = vector.shape_cast %18 : vector<1x1x128xf32> to vector<1x1x128xf32>
      %20 = vector.broadcast %19 : vector<1x1x128xf32> to vector<1x8x128xf32>
      %c0_13 = arith.constant 0 : index
      %c0_14 = arith.constant 0 : index
      %c0_15 = arith.constant 0 : index
      %21 = vector.load %arg5[%c0_13, %c0_14, %c0_15] : memref<1x8x128xf32, #tpu.memory_space<vmem>>, vector<1x8x128xf32>
      tpu.vector_store %arg5[%c0_13, %c0_14, %c0_15], %20 {strides = array<i32>} : memref<1x8x128xf32, #tpu.memory_space<vmem>>, vector<1x8x128xf32>,
      %22 = vector.shape_cast %17 : vector<1x128xf32> to vector<1x1x128xf32>
      %23 = vector.shape_cast %22 : vector<1x1x128xf32> to vector<1x1x128xf32>
      %24 = vector.broadcast %23 : vector<1x1x128xf32> to vector<1x8x128xf32>
      %c0_16 = arith.constant 0 : index
      %c0_17 = arith.constant 0 : index
      %c0_18 = arith.constant 0 : index
      %25 = vector.load %arg6[%c0_16, %c0_17, %c0_18] : memref<1x8x128xf32, #tpu.memory_space<vmem>>, vector<1x8x128xf32>
      tpu.vector_store %arg6[%c0_16, %c0_17, %c0_18], %24 {strides = array<i32>} : memref<1x8x128xf32, #tpu.memory_space<vmem>>, vector<1x8x128xf32>,
    } else {
    }
    return
  }
  func.func @transform_0(%arg0: i32, %arg1: i32) -> (i32, i32) {
    %c0_i32 = arith.constant 0 : i32
    return %arg0, %arg1 : i32, i32
  }
  func.func @transform_1(%arg0: i32, %arg1: i32) -> (i32, i32) {
    %c0_i32 = arith.constant 0 : i32
    %c0_i32_0 = arith.constant 0 : i32
    return %arg1, %c0_i32 : i32, i32
  }
  func.func @transform_2(%arg0: i32, %arg1: i32) -> (i32, i32) {
    %c0_i32 = arith.constant 0 : i32
    %c0_i32_0 = arith.constant 0 : i32
    return %arg0, %c0_i32 : i32, i32
  }
  func.func @transform_3(%arg0: i32, %arg1: i32) -> (i32, i32, i32) {
    %c0_i32 = arith.constant 0 : i32
    %c0_i32_0 = arith.constant 0 : i32
    %c0_i32_1 = arith.constant 0 : i32
    return %arg0, %c0_i32, %c0_i32_0 : i32, i32, i32
  }
  func.func @transform_4(%arg0: i32, %arg1: i32) -> (i32, i32, i32) {
    %c0_i32 = arith.constant 0 : i32
    %c0_i32_0 = arith.constant 0 : i32
    %c0_i32_1 = arith.constant 0 : i32
    return %arg0, %c0_i32, %c0_i32_0 : i32, i32, i32
  }
}

</mosaic_0001>

<bundles_post_ra>
// kernel: tpu_custom_call.1
= control target key start
LH: loop header
LB: loop body
LE: loop exit
PB: predicated region body
PF: predicated region fallthrough
CT: control target
= control target key end

     0   :  { %s1620_s0 = inlined_call_operand.hbm [shape: f32[24,384], index: 0, kind: input, shape index: {}]   ;;  %s1621_s1 = inlined_call_operand.hbm [shape: f32[384,128], index: 1, kind: input, shape index: {}]   ;;  %s1622_s2 = inlined_call_operand.hbm [shape: f32[24,128], index: 2, kind: output, shape index: {0}]   ;;  %s1623_s3 = inlined_call_operand.hbm [shape: f32[3,8,128], index: 3, kind: output, shape index: {1}]   ;;  %s1624_s4 = inlined_call_operand.hbm [shape: f32[3,8,128], index: 4, kind: output, shape index: {2}]  }
   0x1   :  { %1634 = sst [smem:[#allocation23_spill]] %s1624_s4 }
   0x2   :  { %10 = vsyncpa [#allocation3], 0 }
   0x3   :  { %12 = vsyncpa [#allocation3 + $0x1], 0 }
   0x4   :  { %13 = vsyncpa [#allocation6], 0 }
   0x5   :  { %15 = vsyncpa [#allocation6 + $0x1], 0 }
   0x6   :  { %16 = vsyncpa [#allocation4], 0 }
   0x7   :  { %18 = vsyncpa [#allocation4 + $0x1], 0 }
   0x8   :  { %19 = vsyncpa [#allocation9], 0 }
   0x9   :  { %21 = vsyncpa [#allocation9 + $0x1], 0  ;;  %s1178_s15 = smov 0   ;;  %s1180_s16 = smov 0  }
   0xa   :  { %s1182_s17 = smov 0   ;;  %s1184_s18 = smov 0  }
   0xb   :  { %s1186_s19 = smov 0   ;;  %s1188_s20 = smov 0  }
   0xc   :  { %s1190_s21 = smov 0   ;;  %s1192_s22 = smov 0  }
   0xd   :  { %s1194_s23 = smov 0   ;;  %s1196_s24 = smov 0  }
   0xe   :  { %s1198_s25 = smov 0   ;;  %s1200_s26 = smov 0  }
   0xf   :  { %s1202_s27 = smov 0   ;;  %s1204_s28 = smov 0  }
  0x10 LB: > { %1635 = sst [smem:[#allocation15_spill]] %s1088_s15  ;;  %s1247_s29 = sadd.s32 4294967295, %s1140_s28   ;;  %s1140_s28 = sphi %s1204_s28, %s27_s28   ;;  %s1136_s27 = sphi %s1202_s27, %s1679_s27   ;;  %s1132_s26 = sphi %s1200_s26, %s1678_s26   ;;  %s1128_s25 = sphi %s1198_s25, %s1677_s25   ;;  %s1124_s24 = sphi %s1196_s24, %s1676_s24   ;;  %s1120_s23 = sphi %s1194_s23, %s1675_s23   ;;  %s1116_s22 = sphi %s1192_s22, %s1674_s22   ;;  %s1112_s21 = sphi %s1190_s21, %s1673_s21   ;;  %s1108_s20 = sphi %s1188_s20, %s1672_s20   ;;  %s1104_s19 = sphi %s1186_s19, %s1671_s19   ;;  %s1100_s18 = sphi %s1184_s18, %s1670_s18   ;;  %s1096_s17 = sphi %s1182_s17, %s1663_s17   ;;  %s1092_s16 = sphi %s1180_s16, %s1669_s16   ;;  %s1088_s15 = sphi %s1178_s15, %s1668_s15  }
  0x11   : > { %1636 = sst [smem:[#allocation16_spill]] %s1096_s17  ;;  %s36_s5 = sadd.s32 1, %s1132_s26 }
  0x12   : > { %s39_s6 = sadd.s32 1, %s1136_s27  ;;  %p37_p0 = scmp.ge.s32.totalorder %s36_s5, 3 }
  0x13   : > { %s48_s7 = sadd.s32 1, %s1120_s23  ;;  %p55_p1 = scmp.ne.s32.totalorder %s1120_s23, %s1116_s22 }
  0x14   : > { %p56_p2 = scmp.eq.s32.totalorder %s1140_s28, 0  ;;  %s1681_s5 = smov (%p37_p0, %s36_s5), 0 }
  0x15   : > { %1637 = sst [smem:[#allocation17_spill]] %s1681_s5  ;;  %s1683_s6 = smov (!%p37_p0, %s39_s6), %s1136_s27 }
  0x16   : > { %s44_s8 = ssub.s32 %s1132_s26, %s1681_s5  ;;  %p1263_p3 = por %p56_p2, %p55_p1 }
  0x17   : > { %p41_p4 = scmp.ge.s32.totalorder %s1683_s6, 3  ;;  %p61_p5 = scmp.ne.s32.totalorder %s1116_s22, %s1112_s21 }
  0x18   : > { %p62_p6 = scmp.eq.s32.totalorder %s1247_s29, 0  ;;  %p72_p7 = scmp.eq.s32.totalorder %s44_s8, 0 }
  0x19   : > { %s1685_s6 = smov (%p41_p4, %s1683_s6), 0  ;;  %s74_s11 = sadd.s32 1, %s1108_s20 }
  0x1a   : > { %1639 = sst [smem:[#allocation18_spill]] %s1685_s6  ;;  %p1273_p8 = por %p62_p6, %p61_p5 }
  0x1b   : > { %s43_s12 = ssub.s32 %s1136_s27, %s1685_s6  ;;  %p81_p9 = scmp.ne.s32.totalorder %s1108_s20, %s1104_s19 }
  0x1c   : > { %s1640_s10 = scalar_select %p1273_p8, 1, 0 }
  0x1d   : > { %s45_s13 = sor.u32 %s44_s8, %s43_s12  ;;  %p87_p10 = scmp.ne.s32.totalorder %s1104_s19, %s1100_s18 }
  0x1e   : > { %p46_p11 = scmp.eq.s32.totalorder %s45_s13, 0  ;;  %p1286_p12 = por %p81_p9, %p56_p2 }
  0x1f   : > { %s1291_s21 = scalar_select %p72_p7, %s1108_s20, %s74_s11  }
  0x20   : > { %s1294_s30 = scalar_select %p46_p11, %s1120_s23, %s48_s7  }
  0x21   : > { %1642 = sst [smem:[#allocation19_spill]] %s1291_s21  ;;  %p1298_p13 = por %p87_p10, %p62_p6 }
  0x22   : > { %1643 = sst [smem:[#allocation20_spill]] %s1294_s30  ;;  %p98_p0 = scmp.eq.s32.totalorder %s43_s12, 0 }
  0x23   : > { %s1644_s5 = scalar_select %p1298_p13, 1, 0 }
  0x24   : > { %s100_s18 = sadd.s32 1, %s1096_s17  ;;  %p110_p1 = scmp.ne.s32.totalorder %s1096_s17, %s1092_s16 }
  0x25   : > { %s1306_s8 = scalar_select %p98_p0, %s1096_s17, %s100_s18  }
  0x26   : > { %p111_p2 = scmp.eq.s32.totalorder %s1247_s29, 8  ;;  %p116_p4 = scmp.ne.s32.totalorder %s1092_s16, %s1088_s15 }
  0x27   : > { %1645 = sst [smem:[#allocation21_spill]] %s1306_s8  ;;  %s1646_s13 = sadd.s32 4294967294, %s1140_s28  }
  0x28   : > { %p117_p5 = scmp.eq.s32.totalorder %s1646_s13, 8  ;;  %p1313_p7 = por %p111_p2, %p110_p1 }
  0x29   : > { %p750_p6 = scmp.lt.s32.totalorder %s1140_s28, 9  ;;  %s189_s12 = sand.u32 1, %s1120_s23  }
  0x2a   : > { %s1647_s7 = scalar_select %p1313_p7, 1, 0 }
  0x2b   : > { %p1318_p9 = por %p117_p5, %p116_p4  ;;  %s624_s6 = sshll.u32 %s189_s12, 3 }
  0x2c   : > { %s722_s30 = smul.u32 3, %s1136_s27  ;;  %s193_s21 = scalar_lea.vmem [#allocation2], %s624_s6 }
  0x2d   : > { %s1648_s11 = scalar_select %p1318_p9, 1, 0 }
  0x2e   : > { %s202_s18 = sshll.u32 %s193_s21, 4  ;;  %p1326_p10 = pnand %p750_p6, %p1263_p3  ;;  %s1331_s18 = int_to_ptr.vmem [resolvable:$true] %s202_s18 }
  0x2f   : > { %1649 = sst [smem:[#allocation22_spill]] %s1648_s11  ;;  %s198_s13 = sadd.s32 %s1132_s26, %s722_s30 }
  0x30   : > { %s625_s17 = sshll.u32 %s198_s13, 7  ;;  %p1340_p3 = pnand %p750_p6, %p1286_p12 }
  0x31   : > { %s1336_s11 = scalar_lea.hbm %s1620_s0, %s625_s17  ;;  %s190_s9 = scalar_lea.sflag [#allocation3], %s189_s12 }
  0x32   : > { %s870_s21 = scalar_lea.hbm %s1336_s11, 128  ;;  %p872_p0 = pneg %p1326_p10 }
  0x33   : > { %p871_p11 = scmp.ne.s32.totalorder %s1336_s11, %s870_s21  ;;  %s875_s17 = scalar_lea.hbm %s1620_s0, 1152 }
  0x34   : > { %p876_p12 = scmp.lt.u32.totalorder %s1336_s11, %s1620_s0  ;;  %p877_p4 = scmp.lt.u32.totalorder %s875_s17, %s870_s21 }
  0x35   : > { %p873_p1 = pnand %p872_p0, %p871_p11  ;;  %p879_p6 = scmp.lt.u32.totalorder %s870_s21, %s1336_s11 }
  0x36   : > { %p878_p5 = por %p877_p4, %p876_p12 }
  0x37   : > { %p874_p2 = pneg %p873_p1 }
  0x38   : > { %p880_p9 = por %p879_p6, %p878_p5 }
  0x3a   : > { %p881_p7 = pnand %p880_p9, %p874_p2 }
  0x3c   : > { %884 = shalt.err (!%p881_p7)
}
  0x3d   : > { %s885_s12 = scalar_lea.vmem %s1331_s18, 128  ;;  %s1142_s13 = smov [#allocation2]  }
  0x3e   : > { %p886_p11 = scmp.ne.s32.totalorder %s1331_s18, %s885_s12  ;;  %s890_s4 = sshll.u32 %s1142_s13, 4  ;;  %s891_s4 = int_to_ptr.vmem [resolvable:$false] %s890_s4 }
  0x3f   : > { %s892_s15 = scalar_lea.vmem %s891_s4, 256  ;;  %p893_p8 = scmp.lt.s32.totalorder %s1331_s18, %s891_s4 }
  0x40   : > { %p888_p1 = pnand %p886_p11, %p872_p0  ;;  %p894_p12 = scmp.lt.s32.totalorder %s892_s15, %s885_s12 }
  0x42   : > { %p889_p13 = pneg %p888_p1  ;;  %p895_p4 = por %p894_p12, %p893_p8 }
  0x44   : > { %p896_p5 = pnand %p895_p4, %p889_p13 }
  0x46   : > { %899 = shalt.err (!%p896_p5)
}
  0x47   : > { %736 = dma.hbm_to_vmem [thread:$0]  (!%p1326_p10), %s1336_s11, 128, %s1331_s18, %s190_s9  }
  0x48   : > { %p629_p7 = scmp.ge.s32.totalorder %s1140_s28, 1  ;;  %p228_p9 = scmp.lt.s32.totalorder %s1140_s28, 10 }
  0x49   : > { %s209_s21 = sand.u32 1, %s1108_s20   ;;  %s645_s14 = sshll.u32 %s1132_s26, 11 }
  0x4a   : > { %s626_s17 = sshll.u32 %s209_s21, 7  ;;  %p1372_p0 = pnand %p629_p7, %p228_p9 }
  0x4b   : > { %s213_s12 = scalar_lea.vmem [#allocation5], %s626_s17  ;;  %s1380_s15 = scalar_lea.hbm %s1621_s1, %s645_s14 }
  0x4c   : > { %s220_s8 = sshll.u32 %s213_s12, 4  ;;  %s1384_s11 = scalar_lea.sflag [#allocation6], %s209_s21  ;;  %s1382_s8 = int_to_ptr.vmem [resolvable:$true] %s220_s8 }
  0x4d   : > { %s900_s18 = scalar_lea.hbm %s1380_s15, 2048  ;;  %p902_p13 = pneg %p1340_p3 }
  0x4e   : > { %p901_p8 = scmp.ne.s32.totalorder %s1380_s15, %s900_s18  ;;  %s905_s14 = scalar_lea.hbm %s1621_s1, 6144 }
  0x4f   : > { %p906_p6 = scmp.lt.u32.totalorder %s1380_s15, %s1621_s1  ;;  %p907_p11 = scmp.lt.u32.totalorder %s905_s14, %s900_s18 }
  0x50   : > { %p903_p10 = pnand %p902_p13, %p901_p8  ;;  %p909_p12 = scmp.lt.u32.totalorder %s900_s18, %s1380_s15 }
  0x51   : > { %p908_p1 = por %p907_p11, %p906_p6 }
  0x52   : > { %p904_p2 = pneg %p903_p10 }
  0x53   : > { %p910_p4 = por %p909_p12, %p908_p1 }
  0x55   : > { %p911_p5 = pnand %p910_p4, %p904_p2 }
  0x57   : > { %914 = shalt.err (!%p911_p5)
}
  0x58   : > { %s915_s21 = scalar_lea.vmem %s1382_s8, 2048  ;;  %s1143_s4 = smov [#allocation5]  }
  0x59   : > { %p916_p7 = scmp.ne.s32.totalorder %s1382_s8, %s915_s21  ;;  %s920_s9 = sshll.u32 %s1143_s4, 4  ;;  %s921_s9 = int_to_ptr.vmem [resolvable:$false] %s920_s9 }
  0x5a   : > { %s922_s17 = scalar_lea.vmem %s921_s9, 4096  ;;  %p923_p10 = scmp.lt.s32.totalorder %s1382_s8, %s921_s9 }
  0x5b   : > { %p918_p9 = pnand %p916_p7, %p902_p13  ;;  %p924_p6 = scmp.lt.s32.totalorder %s922_s17, %s915_s21 }
  0x5d   : > { %p919_p8 = pneg %p918_p9  ;;  %p925_p11 = por %p924_p6, %p923_p10 }
  0x5f   : > { %p926_p1 = pnand %p925_p11, %p919_p8 }
  0x61   : > { %929 = shalt.err (!%p926_p1)
}
  0x62   : > { %s1144_s18 = smov 128   ;;  %s1145_s14 = smov 8  }
  0x63   : > { %739 = dma.hbm_to_vmem [thread:$0]  (!%p1340_p3), %s1380_s15, 2048, %s1382_s8, %s1384_s11, %s1144_s18, %s1144_s18, %s1145_s14  }
  0x64   : > { %232 = sbr.rel (%p1372_p0) target bundleno = 467 (0x1d3), region = 28  ;;  %s234_s12 = sand.u32 (!%p1372_p0), 1, %s1116_s22  }
  0x65   : > { %s1415_s13 = sshll.u32 (!%p1372_p0), %s234_s12, 3  ;;  %s235_s21 = scalar_lea.sflag (!%p1372_p0), [#allocation3], %s234_s12 }
  0x66   : > { %s238_s4 = scalar_lea.vmem (!%p1372_p0), [#allocation2], %s1415_s13  ;;  %p1653_p13 = scmp.ne.s32.totalorder (!%p1372_p0), %s1640_s10, 0 }
  0x6b   : > { %1071 = dma.done.wait (%p1653_p13), %s235_s21, 128  }
  0x6c   : > { %1073 = vsyncadd (%p1653_p13), %s235_s21, 4294967168  ;;  %s243_s6 = sand.u32 1, %s1104_s19   ;;  %p1654_p3 = scmp.ne.s32.totalorder %s1644_s5, 0 }
  0x6d   : > { %s631_s8 = sshll.u32 %s243_s6, 7  ;;  %s244_s15 = scalar_lea.sflag [#allocation6], %s243_s6 }
  0x6e   : > { %s1423_s30 = scalar_lea.vmem [#allocation5], %s631_s8 }
  0x6f   : > { %1075 = dma.done.wait (%p1654_p3), %s244_s15, 2048  }
  0x70   : > { %1077 = vsyncadd (%p1654_p3), %s244_s15, 4294965248  ;;  %s270_s11 = sand.u32 1, %s1092_s16   ;;  %p635_p0 = scmp.ne.s32.totalorder %s1124_s24, 0 }
  0x71   : > { %s1432_s9 = sshll.u32 %s270_s11, 3  ;;  %v1146_v0 = vmov (!%p635_p0), 0.0  }
  0x72   : > { %s1435_s10 = scalar_lea.vmem [#allocation7], %s1432_s9  ;;  %s279_s17 = scalar_lea.vmem [#allocation8], %s1432_s9 }
  0x73   : > { %s286_s18 = scalar_lea.vmem [#allocation10], %s1432_s9  ;;  %291 = sbr.rel (%p635_p0) target bundleno = 122 (0x7a), region = 40  ;;  %292 = vst [vmem:[%s1435_s10] sm:$0xff] (!%p635_p0), %v1146_v0 }
  0x7a PF: > { %v295_v1 = vld [vmem:[%s1423_s30] sm:$0xff]  ;;  %v296_v2 = vld [vmem:[%s1423_s30 + $0x8] sm:$0xff]  ;;  %v297_v3 = vld [vmem:[%s1423_s30 + $0x10] sm:$0xff]  ;;  %v1147_v4 = vmov 0.0|0.0   ;;  %vm1148_vm0 = vmmov 0   ;;  %v1149_v7 = vmov 0.0  }
  0x7b   : > { %698 = vmatprep.subr.bf16.mxu0 %v1147_v4  ;;  %v699_v5 = vpack.c.bf16 %v296_v2, %v295_v1  ;;  %v298_v6 = vld [vmem:[%s1423_s30 + $0x18] sm:$0xff]  ;;  %695 = vmatprep.mubr.msk.f32.mxu0 %vm1148_vm0, %v1149_v7  ;;  %v299_v9 = vld [vmem:[%s1423_s30 + $0x20] sm:$0xff]  ;;  %v300_v10 = vld [vmem:[%s1423_s30 + $0x28] sm:$0xff]  ;;  %p636_p2 = scmp.ne.s32.totalorder %s1124_s24, 2 }
  0x7c   : > { %v702_v8 = vpack.c.bf16 %v298_v6, %v297_v3  ;;  %v705_v11 = vpack.c.bf16 %v300_v10, %v299_v9  ;;  %v301_v12 = vld [vmem:[%s1423_s30 + $0x30] sm:$0xff]  ;;  %v302_v13 = vld [vmem:[%s1423_s30 + $0x38] sm:$0xff]  ;;  %v303_v15 = vld [vmem:[%s1423_s30 + $0x40] sm:$0xff] }
  0x7d   : > { %700 = vmatpush3.bf16.msra.mxu0 %v699_v5  ;;  %v708_v14 = vpack.c.bf16 %v302_v13, %v301_v12  ;;  %v304_v16 = vld [vmem:[%s1423_s30 + $0x48] sm:$0xff]  ;;  %v305_v18 = vld [vmem:[%s1423_s30 + $0x50] sm:$0xff]  ;;  %v306_v19 = vld [vmem:[%s1423_s30 + $0x58] sm:$0xff] }
  0x7e   : > { %701 = vmatprep.subr.bf16.mxu0 %v1147_v4  ;;  %v711_v17 = vpack.c.bf16 %v304_v16, %v303_v15  ;;  %v714_v20 = vpack.c.bf16 %v306_v19, %v305_v18  ;;  %v307_v21 = vld [vmem:[%s1423_s30 + $0x60] sm:$0xff]  ;;  %v308_v22 = vld [vmem:[%s1423_s30 + $0x68] sm:$0xff]  ;;  %v309_v24 = vld [vmem:[%s1423_s30 + $0x70] sm:$0xff] }
  0x7f   : > { %v717_v23 = vpack.c.bf16 %v308_v22, %v307_v21  ;;  %v310_v25 = vld [vmem:[%s1423_s30 + $0x78] sm:$0xff]  ;;  %v293_v28 = vld [vmem:[%s1435_s10] sm:$0xff] }
  0x80   : > { %v720_v26 = vpack.c.bf16 %v310_v25, %v309_v24  ;;  %v294_v27 = vld [vmem:[%s238_s4] sm:$0xff] }
  0x81   : > { %703 = vmatpush3.bf16.msra.mxu0 %v702_v8 }
  0x82   : > { %704 = vmatprep.subr.bf16.mxu0 %v1147_v4 }
  0x85   : > { %706 = vmatpush3.bf16.msra.mxu0 %v705_v11 }
  0x86   : > { %707 = vmatprep.subr.bf16.mxu0 %v1147_v4 }
  0x89   : > { %709 = vmatpush3.bf16.msra.mxu0 %v708_v14 }
  0x8a   : > { %710 = vmatprep.subr.bf16.mxu0 %v1147_v4 }
  0x8d   : > { %712 = vmatpush3.bf16.msra.mxu0 %v711_v17 }
  0x8e   : > { %713 = vmatprep.subr.bf16.mxu0 %v1147_v4 }
  0x91   : > { %715 = vmatpush3.bf16.msra.mxu0 %v714_v20 }
  0x92   : > { %716 = vmatprep.subr.bf16.mxu0 %v1147_v4 }
  0x95   : > { %718 = vmatpush3.bf16.msra.mxu0 %v717_v23 }
  0x96   : > { %719 = vmatprep.subr.bf16.mxu0 %v1147_v4 }
  0x99   : > { %721 = vmatpush3.bf16.msra.mxu0 %v720_v26 }
  0x9c   : > { %696 = vmatmul.mubr.f32.vlgmr.msra.gmra.mrb[0].mxu0 %v294_v27 }
 0x16c   : > { %386 = sbr.rel (%p636_p2) target bundleno = 393 (0x189), region = 44 }
 0x16f   : > { %v377_v29 = vpop.f32.mrb[0].mxu0 }
 0x170   : > { %v381_v30 = vadd.f32 %v377_v29, %v293_v28  ;;  %v697_v31 = vpop.f32.mrb[1].mxu0 }
 0x172   : > { %382 = vst [vmem:[%s1435_s10] sm:$0xff] %v381_v30 }
 0x179   : > { %v387_v32 = vld [vmem:[%s1435_s10] sm:$0xff] }
 0x17a   : > { %v388_v33 = vrot.slane %v387_v32, 4  ;;  %v394_v34 = vmul.f32 %v387_v32, %v387_v32 }
 0x17c   : > { %v389_v35 = vadd.f32 %v388_v33, %v387_v32  ;;  %v395_v36 = vrot.slane %v394_v34, 4 }
 0x17e   : > { %v390_v37 = vrot.slane %v389_v35, 2  ;;  %v396_v38 = vadd.f32 %v395_v36, %v394_v34 }
 0x180   : > { %v391_v39 = vadd.f32 %v390_v37, %v389_v35  ;;  %v397_v40 = vrot.slane %v396_v38, 2 }
 0x182   : > { %v392_v41 = vrot.slane %v391_v39, 1  ;;  %v398_v42 = vadd.f32 %v397_v40, %v396_v38 }
 0x184   : > { %v393_v43 = vadd.f32 %v392_v41, %v391_v39  ;;  %v399_v44 = vrot.slane %v398_v42, 1 }
 0x186   : > { %401 = vst [vmem:[%s279_s17] sm:$0xff] %v393_v43  ;;  %v400_v45 = vadd.f32 %v399_v44, %v398_v42 }
 0x188   : > { %402 = vst [vmem:[%s286_s18] sm:$0xff] %v400_v45 }
 0x189 PF: > { %s408_s24 = sand.u32 1, %s1247_s29   ;;  %s1469_s5 = sshll.u32 %s1128_s25, 7 }
 0x18a   : > { %s1475_s13 = scalar_lea.hbm %s1623_s3, %s1469_s5  ;;  %s440_s21 = sshll.u32 %s279_s17, 4  ;;  %s1479_s21 = int_to_ptr.vmem [resolvable:$true] %s440_s21 }
 0x18b   : > { %s1485_s29 = scalar_lea.hbm %s1622_s2, %s1469_s5  ;;  %s1487_s25 = scalar_lea.sflag [#allocation9], %s408_s24 }
 0x18c   : > { %s930_s8 = scalar_lea.vmem %s1479_s21, 128  ;;  %p1655_p4 = scmp.ne.s32.totalorder %s1647_s7, 0 }
 0x18d   : > { %p931_p12 = scmp.ne.s32.totalorder %s1479_s21, %s930_s8  ;;  %s1150_s15 = smov [#allocation8]  }
 0x18e   : > { %s934_s30 = sshll.u32 %s1150_s15, 4  ;;  %s935_s30 = int_to_ptr.vmem [resolvable:$false] %s934_s30 }
 0x18f   : > { %p932_p5 = pnand %p931_p12, %p1655_p4  ;;  %s936_s17 = scalar_lea.vmem %s935_s30, 256 }
 0x190   : > { %p937_p9 = scmp.lt.s32.totalorder %s1479_s21, %s935_s30  ;;  %p938_p8 = scmp.lt.s32.totalorder %s936_s17, %s930_s8 }
 0x191   : > { %p933_p7 = pneg %p932_p5 }
 0x192   : > { %p939_p10 = por %p938_p8, %p937_p9 }
 0x194   : > { %p940_p6 = pnand %p939_p10, %p933_p7 }
 0x196   : > { %943 = shalt.err (!%p940_p6)
}
 0x197   : > { %s944_s24 = scalar_lea.hbm %s1475_s13, 128  ;;  %s948_s4 = scalar_lea.hbm %s1623_s3, 384 }
 0x198   : > { %p945_p11 = scmp.ne.s32.totalorder %s1475_s13, %s944_s24  ;;  %p949_p3 = scmp.lt.u32.totalorder %s1475_s13, %s1623_s3 }
 0x199   : > { %p950_p0 = scmp.lt.u32.totalorder %s948_s4, %s944_s24  ;;  %p952_p12 = scmp.lt.u32.totalorder %s944_s24, %s1475_s13 }
 0x19a   : > { %p946_p1 = pnand %p945_p11, %p1655_p4 }
 0x19b   : > { %p951_p2 = por %p950_p0, %p949_p3 }
 0x19c   : > { %p947_p13 = pneg %p946_p1 }
 0x19d   : > { %p953_p5 = por %p952_p12, %p951_p2 }
 0x19f   : > { %p954_p7 = pnand %p953_p5, %p947_p13 }
 0x1a1   : > { %957 = shalt.err (!%p954_p7)
}
 0x1a2   : > { %728 = dma.vmem_to_hbm [thread:$0]  (%p1655_p4), %s1479_s21, 128, %s1475_s13, %s1487_s25  }
 0x1a3   : > { %s427_s8 = sshll.u32 %s1435_s10, 4  ;;  %s1656_s14 = sld [smem:[#allocation23_spill]]  ;;  %s1518_s8 = int_to_ptr.vmem [resolvable:$true] %s427_s8 }
 0x1a4   : > { %s1522_s24 = sshll.u32 %s286_s18, 4  ;;  %s404_s4 = scalar_lea.sflag [#allocation4], %s270_s11  ;;  %s454_s24 = int_to_ptr.vmem [resolvable:$true] %s1522_s24 }
 0x1a5   : > { %s958_s6 = scalar_lea.vmem %s1518_s8, 128  ;;  %s1151_s10 = smov [#allocation7]  }
 0x1a6   : > { %p959_p9 = scmp.ne.s32.totalorder %s1518_s8, %s958_s6  ;;  %s962_s13 = sshll.u32 %s1151_s10, 4  ;;  %s963_s13 = int_to_ptr.vmem [resolvable:$false] %s962_s13 }
 0x1a7   : > { %p965_p6 = scmp.lt.s32.totalorder %s1518_s8, %s963_s13 }
 0x1a8   : > { %p960_p8 = pnand %p959_p9, %p1655_p4 }
 0x1a9   : > { %s1516_s12 = scalar_lea.hbm %s1656_s14, %s1469_s5  ;;  %s964_s5 = scalar_lea.vmem %s963_s13, 256 }
 0x1aa   : > { %p961_p10 = pneg %p960_p8  ;;  %p966_p11 = scmp.lt.s32.totalorder %s964_s5, %s958_s6 }
 0x1ac   : > { %p967_p1 = por %p966_p11, %p965_p6 }
 0x1ae   : > { %p968_p13 = pnand %p967_p1, %p961_p10 }
 0x1b0   : > { %971 = shalt.err (!%p968_p13)
}
 0x1b1   : > { %s972_s11 = scalar_lea.hbm %s1485_s29, 128  ;;  %s976_s21 = scalar_lea.hbm %s1622_s2, 384 }
 0x1b2   : > { %p973_p3 = scmp.ne.s32.totalorder %s1485_s29, %s972_s11  ;;  %p977_p12 = scmp.lt.u32.totalorder %s1485_s29, %s1622_s2 }
 0x1b3   : > { %p978_p5 = scmp.lt.u32.totalorder %s976_s21, %s972_s11  ;;  %p980_p9 = scmp.lt.u32.totalorder %s972_s11, %s1485_s29 }
 0x1b4   : > { %p974_p0 = pnand %p973_p3, %p1655_p4 }
 0x1b5   : > { %p979_p7 = por %p978_p5, %p977_p12 }
 0x1b6   : > { %p975_p2 = pneg %p974_p0 }
 0x1b7   : > { %p981_p8 = por %p980_p9, %p979_p7 }
 0x1b9   : > { %p982_p10 = pnand %p981_p8, %p975_p2 }
 0x1bb   : > { %985 = shalt.err (!%p982_p10)
}
 0x1bc   : > { %727 = dma.vmem_to_hbm [thread:$0]  (%p1655_p4), %s1518_s8, 128, %s1485_s29, %s404_s4  }
 0x1bd   : > { %s986_s17 = scalar_lea.vmem %s454_s24, 128  ;;  %s1152_s6 = smov [#allocation10]  }
 0x1be   : > { %p987_p6 = scmp.ne.s32.totalorder %s454_s24, %s986_s17  ;;  %s990_s10 = sshll.u32 %s1152_s6, 4  ;;  %s991_s10 = int_to_ptr.vmem [resolvable:$false] %s990_s10 }
 0x1bf   : > { %s992_s13 = scalar_lea.vmem %s991_s10, 256  ;;  %p993_p13 = scmp.lt.s32.totalorder %s454_s24, %s991_s10 }
 0x1c0   : > { %p988_p11 = pnand %p987_p6, %p1655_p4  ;;  %p994_p3 = scmp.lt.s32.totalorder %s992_s13, %s986_s17 }
 0x1c2   : > { %p989_p1 = pneg %p988_p11  ;;  %p995_p0 = por %p994_p3, %p993_p13 }
 0x1c4   : > { %p996_p2 = pnand %p995_p0, %p989_p1 }
 0x1c6   : > { %999 = shalt.err (!%p996_p2)
}
 0x1c7   : > { %s1000_s29 = scalar_lea.hbm %s1516_s12, 128  ;;  %s1004_s5 = scalar_lea.hbm %s1656_s14, 384 }
 0x1c8   : > { %p1001_p12 = scmp.ne.s32.totalorder %s1516_s12, %s1000_s29  ;;  %p1005_p9 = scmp.lt.u32.totalorder %s1516_s12, %s1656_s14 }
 0x1c9   : > { %p1006_p8 = scmp.lt.u32.totalorder %s1004_s5, %s1000_s29  ;;  %p1008_p6 = scmp.lt.u32.totalorder %s1000_s29, %s1516_s12 }
 0x1ca   : > { %p1002_p5 = pnand %p1001_p12, %p1655_p4 }
 0x1cb   : > { %p1007_p10 = por %p1006_p8, %p1005_p9 }
 0x1cc   : > { %p1003_p7 = pneg %p1002_p5 }
 0x1cd   : > { %p1009_p11 = por %p1008_p6, %p1007_p10 }
 0x1cf   : > { %p1010_p1 = pnand %p1009_p11, %p1003_p7 }
 0x1d1   : > { %1013 = shalt.err (!%p1010_p1)
}
 0x1d2   : > { %729 = dma.vmem_to_hbm [thread:$0]  (%p1655_p4), %s454_s24, 128, %s1516_s12, %s1487_s25  }
 0x1d3 PF: > { %s1657_s18 = sld [smem:[#allocation15_spill]]  ;;  %s1658_s21 = sld [smem:[#allocation22_spill]] }
 0x1d4   : > { %p751_p13 = scmp.ge.s32.totalorder %s1140_s28, 2 }
 0x1d9   : > { %s465_s15 = sand.u32 1, %s1657_s18   ;;  %p1659_p3 = scmp.ne.s32.totalorder %s1658_s21, 0 }
 0x1da   : > { %s466_s30 = scalar_lea.sflag [#allocation4], %s465_s15 }
 0x1db   : > { %p741_p0 = pnand %p751_p13, %p1659_p3 }
 0x1dd   : > { %1079 = dma.done.wait (!%p741_p0), %s466_s30, 128  }
 0x1de   : > { %1081 = vsyncadd (!%p741_p0), %s466_s30, 4294967168  ;;  %s1660_s17 = sadd.s32 4294967294, %s1140_s28  }
 0x1df   : > { %s474_s6 = sand.u32 1, %s1660_s17  }
 0x1e0   : > { %s475_s10 = scalar_lea.sflag [#allocation9], %s474_s6 }
 0x1e1   : > { %1083 = dma.done.wait (!%p741_p0), %s475_s10, 256  }
 0x1e2   : > { %1085 = vsyncadd (!%p741_p0), %s475_s10, 4294967040  ;;  %s27_s28 = sadd.s32 1, %s1140_s28   ;;  %s1662_s25 = sld [smem:[#allocation16_spill]] }
 0x1e3   : > { %p1573_p4 = scmp.ge.s32.totalorder %s27_s28, 11   ;;  %s1663_s17 = sld [smem:[#allocation21_spill]] }
 0x1e4   : > { %s1664_s12 = sld [smem:[#allocation19_spill]]  ;;  %s1665_s24 = sld [smem:[#allocation20_spill]] }
 0x1e5   : > { %s1666_s13 = sld [smem:[#allocation17_spill]]  ;;  %s1667_s29 = sld [smem:[#allocation18_spill]] }
 0x1e6   : > { %s1668_s15 = smov %s1092_s16  ;;  %s1670_s18 = smov %s1104_s19 }
 0x1e7   : > { %s1671_s19 = smov %s1108_s20  ;;  %s1673_s21 = smov %s1116_s22 }
 0x1e8   : > { %s1669_s16 = smov %s1662_s25  ;;  %s1674_s22 = smov %s1120_s23 }
 0x1e9   : > { %s1677_s25 = smov %s1136_s27  ;;  %26 = sbr.rel (!%p1573_p4) target bundleno = 16 (0x10), region = 126 }
 0x1ea   : > { %s1672_s20 = smov %s1664_s12  ;;  %s1675_s23 = smov %s1665_s24 }
 0x1eb   : > { %s1676_s24 = smov %s1132_s26  ;;  %s1678_s26 = smov %s1666_s13 }
 0x1ec   : > { %s1679_s27 = smov %s1667_s29 }
 0x1f0   :  { %489 = vsyncpa [#allocation3], 1 }
 0x1f1   :  { %491 = vsyncpa [#allocation3 + $0x1], 1 }
 0x1f2   :  { %492 = vsyncpa [#allocation6], 1 }
 0x1f3   :  { %494 = vsyncpa [#allocation6 + $0x1], 1 }
 0x1f4   :  { %495 = vsyncpa [#allocation4], 1 }
 0x1f5   :  { %497 = vsyncpa [#allocation4 + $0x1], 1 }
 0x1f6   :  { %498 = vsyncpa [#allocation9], 1 }
 0x1f7   :  { %500 = vsyncpa [#allocation9 + $0x1], 1 }

</bundles_post_ra>
